<compile_context>
chip_gen: v5e
topology: v5e:2x2
jax: 0.10.0
libtpu: 0.0.40
codegen_flags: <defaults>
</compile_context>

<pallas_src>
import functools

import jax
import jax.numpy as jnp
from jax.experimental import pallas as pl
from jax.experimental.pallas import tpu as pltpu


def _round_up(x: int, m: int) -> int:
    return (x + m - 1) // m * m


def _cdiv(a: int, b: int) -> int:
    return (a + b - 1) // b


def mlp_softmax_kernel(x_ref, w1_ref, b1_ref, w2_ref, b2_ref, o_ref):
    # Linear 1: bf16 x bf16 -> f32 accumulate on the MXU, bias + ReLU in f32.
    h = jnp.dot(x_ref[...], w1_ref[...], preferred_element_type=jnp.float32)   # (TB, H_pad)
    h = jnp.maximum(h + b1_ref[...], 0.0)
    # Dropout(p): identity in eval mode.
    # Linear 2: cast activations to bf16 so the MXU stays on the single-pass bf16 path.
    logits = jnp.dot(h.astype(jnp.bfloat16), w2_ref[...],
                     preferred_element_type=jnp.float32)                       # (TB, A_pad)
    logits = logits + b2_ref[...]          # padded action lanes get -1e30 -> softmax mass 0
    # Numerically stable softmax over the lane-dense padded action dim (f32).
    m = jnp.max(logits, axis=-1, keepdims=True)
    e = jnp.exp(logits - m)
    s = jnp.sum(e, axis=-1, keepdims=True)
    probs = e * pl.reciprocal(s, approx=False)   # EUP reciprocal, exact
    # Store only the real action columns; output array last dim == n_actions.
    n_act = o_ref.shape[-1]
    o_ref[...] = probs[:, :n_act].astype(o_ref.dtype)


def pad_params(w1, b1, w2, b2):
    """Pad hidden / action dims to lane-dense multiples of 128 and cast matmul operands to bf16.

    Done once at parameter-prep time, not per forward call.
    """
    n_obs, hidden = w1.shape
    n_actions = w2.shape[1]
    h_pad = _round_up(hidden, 128)
    a_pad = _round_up(n_actions, 128)
    w1p = jnp.zeros((n_obs, h_pad), jnp.bfloat16).at[:, :hidden].set(w1.astype(jnp.bfloat16))
    b1p = jnp.zeros((1, h_pad), jnp.float32).at[:, :hidden].set(b1.astype(jnp.float32))
    w2p = jnp.zeros((h_pad, a_pad), jnp.bfloat16).at[:hidden, :n_actions].set(
        w2.astype(jnp.bfloat16))
    # Padded logits must be very negative so they contribute exactly 0 to the softmax denom.
    b2p = jnp.full((1, a_pad), -1e30, jnp.float32).at[:, :n_actions].set(b2.astype(jnp.float32))
    return w1p, b1p, w2p, b2p


@functools.partial(jax.jit, static_argnames=("n_actions", "tile_b_max"))
def mc_reinforce_forward(x, w1p, b1p, w2p, b2p, *, n_actions, tile_b_max=2048):
    """x: (B, n_obs) f32; padded params from pad_params(). Returns (B, n_actions) f32 probs."""
    B, n_obs = x.shape

    # Batch tiling: multiples of 16 (bf16 sublane packing), tiles as large as tile_b_max,
    # tight padding, and >=2 grid steps for large batches so both v7x TensorCores get work.
    b16 = _round_up(max(B, 1), 16)
    n_tiles = _cdiv(b16, tile_b_max)
    if n_tiles == 1 and b16 >= 512:
        n_tiles = 2
    tile_b = _round_up(_cdiv(b16, n_tiles), 16)
    b_pad = tile_b * n_tiles

    xb = x.astype(jnp.bfloat16)
    if b_pad != B:
        xb = jnp.zeros((b_pad, n_obs), jnp.bfloat16).at[:B].set(xb)

    out = pl.pallas_call(
        mlp_softmax_kernel,
        out_shape=jax.ShapeDtypeStruct((b_pad, n_actions), jnp.float32),
        grid_spec=pltpu.PrefetchScalarGridSpec(
            num_scalar_prefetch=0,
            grid=(n_tiles,),
            in_specs=[
                pl.BlockSpec((tile_b, n_obs), lambda i: (i, 0)),   # x tile, streamed over batch
                pl.BlockSpec(w1p.shape, lambda i: (0, 0)),          # weights VMEM-resident
                pl.BlockSpec(b1p.shape, lambda i: (0, 0)),
                pl.BlockSpec(w2p.shape, lambda i: (0, 0)),
                pl.BlockSpec(b2p.shape, lambda i: (0, 0)),
            ],
            out_specs=pl.BlockSpec((tile_b, n_actions), lambda i: (i, 0)),
        ),
        compiler_params=pltpu.CompilerParams(
            dimension_semantics=("parallel",),   # v7x: shard batch tiles across both TCs
        ),
    )(xb, w1p, b1p, w2p, b2p)
    return out if b_pad == B else out[:B]


def init_params(key, n_observations, hidden_size, n_actions):
    """Deterministic init mimicking torch.nn.Linear default (uniform +-1/sqrt(fan_in))."""
    k1, k2, k3, k4 = jax.random.split(key, 4)
    bound1 = 1.0 / jnp.sqrt(jnp.float32(n_observations))
    bound2 = 1.0 / jnp.sqrt(jnp.float32(hidden_size))
    w1 = jax.random.uniform(k1, (n_observations, hidden_size), jnp.float32, -bound1, bound1)
    b1 = jax.random.uniform(k2, (1, hidden_size), jnp.float32, -bound1, bound1)
    w2 = jax.random.uniform(k3, (hidden_size, n_actions), jnp.float32, -bound2, bound2)
    b2 = jax.random.uniform(k4, (1, n_actions), jnp.float32, -bound2, bound2)
    return w1, b1, w2, b2


if __name__ == "__main__":
    # Small shapes consistent with the module's forward.
    batch = 8
    n_observations = 16
    hidden_size = 32
    n_actions = 8

    key = jax.random.PRNGKey(0)
    kx, kp = jax.random.split(key)
    x = jax.random.normal(kx, (batch, n_observations), jnp.float32)
    w1, b1, w2, b2 = init_params(kp, n_observations, hidden_size, n_actions)
    w1p, b1p, w2p, b2p = pad_params(w1, b1, w2, b2)

    probs = mc_reinforce_forward(x, w1p, b1p, w2p, b2p, n_actions=n_actions)
    probs = jax.block_until_ready(probs)
    assert probs.shape == (batch, n_actions)

    # Reference 1: same math as the kernel (bf16 matmul operands, f32 accumulation/softmax).
    xb = x.astype(jnp.bfloat16)
    h_bf = jnp.maximum(
        jnp.dot(xb, w1.astype(jnp.bfloat16), preferred_element_type=jnp.float32) + b1, 0.0)
    logits_bf = jnp.dot(h_bf.astype(jnp.bfloat16), w2.astype(jnp.bfloat16),
                        preferred_element_type=jnp.float32) + b2
    ref_bf = jax.nn.softmax(logits_bf, axis=-1)
    assert jnp.allclose(probs, ref_bf, atol=1e-3, rtol=1e-3)

    # Reference 2: full-f32 PyTorch-equivalent math (loose tolerance for the bf16 MXU path).
    h_ref = jnp.maximum(x @ w1 + b1, 0.0)
    ref = jax.nn.softmax(h_ref @ w2 + b2, axis=-1)
    assert jnp.allclose(probs, ref, atol=3e-2, rtol=3e-2)
    assert jnp.allclose(jnp.sum(probs, axis=-1), 1.0, atol=1e-5)

    print("KERNEL_OK")
</pallas_src>

<mosaic_0001>
module attributes {stable_mosaic.version = 11 : i64} {
  func.func @mlp_softmax_kernel(%arg0: i32, %arg1: memref<16x16xbf16, #tpu.memory_space<vmem>>, %arg2: memref<16x128xbf16, #tpu.memory_space<vmem>>, %arg3: memref<1x128xf32, #tpu.memory_space<vmem>>, %arg4: memref<128x128xbf16, #tpu.memory_space<vmem>>, %arg5: memref<1x128xf32, #tpu.memory_space<vmem>>, %arg6: memref<16x8xf32, #tpu.memory_space<vmem>>) attributes {dimension_semantics = [#tpu.dimension_semantics<parallel>], iteration_bounds = array<i64: 1>, scalar_prefetch = 0 : i64, scratch_operands = 0 : i64, tpu.core_type = #tpu.core_type<tc>, window_params = [{transform_indices = @transform_0, window_bounds = array<i64: 16, 16>}, {pipeline_mode = #tpu.pipeline_mode<synchronous>, transform_indices = @transform_1, window_bounds = array<i64: 16, 128>}, {pipeline_mode = #tpu.pipeline_mode<synchronous>, transform_indices = @transform_2, window_bounds = array<i64: 1, 128>}, {pipeline_mode = #tpu.pipeline_mode<synchronous>, transform_indices = @transform_3, window_bounds = array<i64: 128, 128>}, {pipeline_mode = #tpu.pipeline_mode<synchronous>, transform_indices = @transform_4, window_bounds = array<i64: 1, 128>}, {transform_indices = @transform_5, window_bounds = array<i64: 16, 8>}]} {
    %c0 = arith.constant 0 : index
    %c0_0 = arith.constant 0 : index
    %0 = vector.load %arg1[%c0, %c0_0] : memref<16x16xbf16, #tpu.memory_space<vmem>>, vector<16x16xbf16>
    %c0_1 = arith.constant 0 : index
    %c0_2 = arith.constant 0 : index
    %1 = vector.load %arg2[%c0_1, %c0_2] : memref<16x128xbf16, #tpu.memory_space<vmem>>, vector<16x128xbf16>
    %cst = arith.constant dense<0.000000e+00> : vector<16x128xf32>
    %2 = tpu.matmul %0, %1, %cst {dimension_numbers = #tpu.dot_dimension_numbers<[1], [0], [0], [1], [0, 0, 1, 1], [], []>} : vector<16x16xbf16>, vector<16x128xbf16>, vector<16x128xf32> -> vector<16x128xf32>
    %c0_3 = arith.constant 0 : index
    %c0_4 = arith.constant 0 : index
    %3 = vector.load %arg3[%c0_3, %c0_4] : memref<1x128xf32, #tpu.memory_space<vmem>>, vector<1x128xf32>
    %4 = vector.broadcast %3 : vector<1x128xf32> to vector<16x128xf32>
    %5 = arith.addf %2, %4 : vector<16x128xf32>
    %cst_5 = arith.constant 0.000000e+00 : f32
    %6 = vector.broadcast %cst_5 : f32 to vector<16x128xf32>
    %7 = arith.maximumf %5, %6 : vector<16x128xf32>
    %8 = arith.truncf %7 : vector<16x128xf32> to vector<16x128xbf16>
    %c0_6 = arith.constant 0 : index
    %c0_7 = arith.constant 0 : index
    %9 = vector.load %arg4[%c0_6, %c0_7] : memref<128x128xbf16, #tpu.memory_space<vmem>>, vector<128x128xbf16>
    %cst_8 = arith.constant dense<0.000000e+00> : vector<16x128xf32>
    %10 = tpu.matmul %8, %9, %cst_8 {dimension_numbers = #tpu.dot_dimension_numbers<[1], [0], [0], [1], [0, 0, 1, 1], [], []>} : vector<16x128xbf16>, vector<128x128xbf16>, vector<16x128xf32> -> vector<16x128xf32>
    %c0_9 = arith.constant 0 : index
    %c0_10 = arith.constant 0 : index
    %11 = vector.load %arg5[%c0_9, %c0_10] : memref<1x128xf32, #tpu.memory_space<vmem>>, vector<1x128xf32>
    %12 = vector.broadcast %11 : vector<1x128xf32> to vector<16x128xf32>
    %13 = arith.addf %10, %12 : vector<16x128xf32>
    %cst_11 = arith.constant dense<0xFF800000> : vector<16xf32>
    %14 = vector.multi_reduction <maximumf>, %13, %cst_11 [1] : vector<16x128xf32> to vector<16xf32>
    %15 = vector.shape_cast %14 : vector<16xf32> to vector<16x1xf32>
    %16 = vector.broadcast %15 : vector<16x1xf32> to vector<16x128xf32>
    %17 = arith.subf %13, %16 : vector<16x128xf32>
    %18 = math.exp %17 : vector<16x128xf32>
    %cst_12 = arith.constant dense<0.000000e+00> : vector<16xf32>
    %19 = vector.multi_reduction <add>, %18, %cst_12 [1] : vector<16x128xf32> to vector<16xf32>
    %20 = vector.shape_cast %19 : vector<16xf32> to vector<16x1xf32>
    %21 = tpu.reciprocal %20 : vector<16x1xf32> -> vector<16x1xf32>
    %22 = vector.broadcast %21 : vector<16x1xf32> to vector<16x128xf32>
    %23 = arith.mulf %18, %22 : vector<16x128xf32>
    %24 = vector.extract_strided_slice %23 {offsets = [0, 0], sizes = [16, 8], strides = [1, 1]} : vector<16x128xf32> to vector<16x8xf32>
    %c0_13 = arith.constant 0 : index
    %c0_14 = arith.constant 0 : index
    %25 = vector.load %arg6[%c0_13, %c0_14] : memref<16x8xf32, #tpu.memory_space<vmem>>, vector<16x8xf32>
    tpu.vector_store %arg6[%c0_13, %c0_14], %24 {strides = array<i32>} : memref<16x8xf32, #tpu.memory_space<vmem>>, vector<16x8xf32>,
    return
  }
  func.func @transform_0(%arg0: i32) -> (i32, i32) {
    %c0_i32 = arith.constant 0 : i32
    %c0_i32_0 = arith.constant 0 : i32
    return %arg0, %c0_i32 : i32, i32
  }
  func.func @transform_1(%arg0: i32) -> (i32, i32) {
    %c0_i32 = arith.constant 0 : i32
    %c0_i32_0 = arith.constant 0 : i32
    %c0_i32_1 = arith.constant 0 : i32
    return %c0_i32, %c0_i32_0 : i32, i32
  }
  func.func @transform_2(%arg0: i32) -> (i32, i32) {
    %c0_i32 = arith.constant 0 : i32
    %c0_i32_0 = arith.constant 0 : i32
    %c0_i32_1 = arith.constant 0 : i32
    return %c0_i32, %c0_i32_0 : i32, i32
  }
  func.func @transform_3(%arg0: i32) -> (i32, i32) {
    %c0_i32 = arith.constant 0 : i32
    %c0_i32_0 = arith.constant 0 : i32
    %c0_i32_1 = arith.constant 0 : i32
    return %c0_i32, %c0_i32_0 : i32, i32
  }
  func.func @transform_4(%arg0: i32) -> (i32, i32) {
    %c0_i32 = arith.constant 0 : i32
    %c0_i32_0 = arith.constant 0 : i32
    %c0_i32_1 = arith.constant 0 : i32
    return %c0_i32, %c0_i32_0 : i32, i32
  }
  func.func @transform_5(%arg0: i32) -> (i32, i32) {
    %c0_i32 = arith.constant 0 : i32
    %c0_i32_0 = arith.constant 0 : i32
    return %arg0, %c0_i32 : i32, i32
  }
}

</mosaic_0001>

<bundles_post_ra>
// kernel: mc_reinforce_forward.1
= control target key start
LH: loop header
LB: loop body
LE: loop exit
PB: predicated region body
PF: predicated region fallthrough
CT: control target
= control target key end

     0   :  { %10 = vsyncpa [#allocation3], 0  ;;  %s301_s21 = smov [#allocation2]   ;;  %s302_s23 = smov 64   ;;  %s357_s0 = inlined_call_operand.vmem [shape: bf16[16,16], index: 0, kind: input, shape index: {}]   ;;  %s358_s1 = inlined_call_operand.vmem [shape: bf16[16,128], index: 1, kind: input, shape index: {}]   ;;  %s359_s2 = inlined_call_operand.vmem [shape: f32[1,128], index: 2, kind: input, shape index: {}]   ;;  %s360_s3 = inlined_call_operand.hbm [shape: bf16[128,128], index: 3, kind: input, shape index: {}]   ;;  %s361_s4 = inlined_call_operand.vmem [shape: f32[1,128], index: 4, kind: input, shape index: {}]   ;;  %s362_s5 = inlined_call_operand.vmem [shape: f32[16,8], index: 5, kind: output, shape index: {}]  }
   0x1   :  { %s21_s20 = sshll.u32 %s360_s3, 4  ;;  %s23_s22 = sshll.u32 %s301_s21, 4  ;;  %s22_s20 = int_to_ptr.hbm [resolvable:$true] %s21_s20  ;;  %s24_s22 = int_to_ptr.vmem [resolvable:$true] %s23_s22 }
   0x2   :  { %s303_s24 = smov 4  }
   0x3   :  { %29 = dma.hbm_to_vmem [thread:$0]  %s22_s20, 1024, %s24_s22, [#allocation3], %s302_s23, %s302_s23, %s303_s24  }
   0x4   :  { %299 = dma.done.wait [#allocation3], 1024  }
   0x5   :  { %300 = vsyncadd [#allocation3], 4294966272  ;;  %v253_v0 = vld [vmem:[%s358_s1] sm:$0xff]  ;;  %v261_v1 = vld [vmem:[#allocation2 + $0x38] sm:$0xff]  ;;  %vm56_vm0 = vcmask 130048   ;;  %vm203_vm5 = vcmask 64512  }
   0x6   :  { %v252_v2 = vld [vmem:[%s357_s0] sm:$0xff]  ;;  %67 = vmatpush.bf16.msra.mxu0 %v253_v0  ;;  %145 = vmatpush.bf16.msra.mxu1 %v261_v1  ;;  %v260_v3 = vld [vmem:[#allocation2 + $0x30] sm:$0xff]  ;;  %v259_v4 = vld [vmem:[#allocation2 + $0x28] sm:$0xff] }
   0x7   :  { %v258_v5 = vld [vmem:[#allocation2 + $0x20] sm:$0xff]  ;;  %v257_v6 = vld [vmem:[#allocation2 + $0x18] sm:$0xff]  ;;  %v256_v7 = vld [vmem:[#allocation2 + $0x10] sm:$0xff] }
   0x8   :  { %v255_v8 = vld [vmem:[#allocation2 + $0x8] sm:$0xff]  ;;  %v254_v9 = vld [vmem:[#allocation2] sm:$0xff] }
   0x9   :  { %219 = vmatmul.msk.bf16.vlgmr.msra.gmra.mxu0 %vm56_vm0, %v252_v2  ;;  %v265_v11 = vld [vmem:[%s359_s2] ss:$0 sm:$0xff] }
   0xa   :  { %146 = vmatpush.bf16.msra.mxu1 %v260_v3  ;;  %v266_v18 = vld [vmem:[%s361_s4] ss:$0 sm:$0xff] }
   0xe   :  { %147 = vmatpush.bf16.msra.mxu1 %v259_v4 }
  0x12   :  { %148 = vmatpush.bf16.msra.mxu1 %v258_v5 }
  0x16   :  { %149 = vmatpush.bf16.msra.mxu1 %v257_v6 }
  0x1a   :  { %150 = vmatpush.bf16.msra.mxu1 %v256_v7 }
  0x1e   :  { %151 = vmatpush.bf16.msra.mxu1 %v255_v8 }
  0x22   :  { %152 = vmatpush.bf16.msra.mxu1 %v254_v9 }
  0x86   :  { %v69_v10 = vpop.f32.mrf.mxu0 }
  0x87   :  { %v70_v12 = vadd.f32 %v265_v11, %v69_v10 }
  0x89   :  { %v74_v15 = vmax.f32 %v70_v12, 0.0 }
  0x8e   :  { %v71_v13 = vpop.f32.mrf.mxu0 }
  0x8f   :  { %v72_v14 = vadd.f32 %v265_v11, %v71_v13 }
  0x91   :  { %v75_v16 = vmax.f32 %v72_v14, 0.0 }
  0x93   :  { %v76_v17 = vpack.c.bf16 %v75_v16, %v74_v15 }
  0x95   :  { %153 = vmatmul.bf16.vlgmr.msra.gmra.mxu1 %v76_v17 }
 0x112   :  { %v154_v19 = vpop.f32.mrf.mxu1 }
 0x113   :  { %v155_v20 = vadd.f32 %v266_v18, %v154_v19 }
 0x115   :  { %159 = vmax.xlane.f32.xlu0 %v155_v20 }
 0x11a   :  { %v156_v21 = vpop.f32.mrf.mxu1 }
 0x11b   :  { %v157_v22 = vadd.f32 %v266_v18, %v156_v21 }
 0x11d   :  { %161 = vmax.xlane.f32.xlu0 %v157_v22 }
 0x188   :  { %v160_v23 = vpop.xlane.xlu0 %159 }
 0x189   :  { %v163_v24 = vsub.f32 %v155_v20, %v160_v23 }
 0x18b   :  { %v165_v25 = vmul.f32 1.442695, %v163_v24 }
 0x18d   :  { %267 = vpow2.f32 %v165_v25 }
 0x190   :  { %v162_v26 = vpop.xlane.xlu0 %161 }
 0x191   :  { %v164_v27 = vsub.f32 %v157_v22, %v162_v26 }
 0x193   :  { %v268_v28 = vpop.eup %267  ;;  %v167_v29 = vmul.f32 1.442695, %v164_v27 }
 0x194   :  { %169 = vadd.xlane.f32.xlu1 %v268_v28 }
 0x195   :  { %269 = vpow2.f32 %v167_v29 }
 0x19b   :  { %v270_v30 = vpop.eup %269 }
 0x19c   :  { %171 = vadd.xlane.f32.xlu1 %v270_v30 }
 0x207   :  { %v170_v31 = vpop.xlane.xlu1 %169 }
 0x208   :  { %271 = vrcp.f32 %v170_v31  ;;  %v184_v36 = vand.u32 2147483648, %v170_v31  ;;  %v182_v38 = vand.u32 2147483647, %v170_v31  ;;  %vm178_vm2 = vweird.f32 %v170_v31 }
 0x20a   :  { %v185_v41 = vor.u32 1.1754944e-38, %v184_v36  ;;  %vm183_vm4 = vcmp.eq.f32.partialorder %v182_v38, 8.507059e+37 }
 0x20e   :  { %v272_v32 = vpop.eup %271 }
 0x20f   :  { %v174_v33 = vmul.f32 %v272_v32, %v170_v31  ;;  %v172_v34 = vpop.xlane.xlu1 %171  ;;  %vm179_vm1 = vweird.f32 %v272_v32 }
 0x210   :  { %273 = vrcp.f32 %v172_v34  ;;  %vm180_vm3 = vmor %vm178_vm2, %vm179_vm1  ;;  %v198_v47 = vand.u32 2147483648, %v172_v34  ;;  %v196_v49 = vand.u32 2147483647, %v172_v34  ;;  %vm192_vm7 = vweird.f32 %v172_v34 }
 0x211   :  { %v175_v35 = vsub.f32 1.0, %v174_v33 }
 0x212   :  { %v199_v51 = vor.u32 1.1754944e-38, %v198_v47  ;;  %vm197_vm9 = vcmp.eq.f32.partialorder %v196_v49, 8.507059e+37 }
 0x213   :  { %v176_v37 = vmul.f32 %v272_v32, %v175_v35 }
 0x215   :  { %v177_v39 = vadd.f32 %v272_v32, %v176_v37 }
 0x216   :  { %v274_v40 = vpop.eup %273 }
 0x217   :  { %v181_v42 = vsel %vm180_vm3, %v272_v32, %v177_v39  ;;  %v188_v43 = vmul.f32 %v274_v40, %v172_v34  ;;  %vm193_vm6 = vweird.f32 %v274_v40 }
 0x218   :  { %v186_v44 = vsel %vm183_vm4, %v185_v41, %v181_v42  ;;  %vm194_vm8 = vmor %vm192_vm7, %vm193_vm6 }
 0x219   :  { %v201_v45 = vmul.f32 %v268_v28, %v186_v44  ;;  %v189_v46 = vsub.f32 1.0, %v188_v43 }
 0x21b   :  { %204 = vst.msk [vmem:[%s362_s5] sm:$0xff] %vm203_vm5, %v201_v45  ;;  %v190_v48 = vmul.f32 %v274_v40, %v189_v46 }
 0x21d   :  { %v191_v50 = vadd.f32 %v274_v40, %v190_v48 }
 0x21f   :  { %v195_v52 = vsel %vm194_vm8, %v274_v40, %v191_v50 }
 0x220   :  { %v200_v53 = vsel %vm197_vm9, %v199_v51, %v195_v52 }
 0x221   :  { %v202_v54 = vmul.f32 %v270_v30, %v200_v53 }
 0x223   :  { %205 = vst.msk [vmem:[%s362_s5 + $0x8] sm:$0xff] %vm203_vm5, %v202_v54 }
 0x224   :  { %210 = vsyncpa [#allocation3], 1 }

</bundles_post_ra>
